<compile_context>
chip_gen: v5e
topology: v5e:2x2
jax: 0.10.0
libtpu: 0.0.40
codegen_flags: <defaults>
</compile_context>

<pallas_src>
import functools
import math

import jax
import jax.numpy as jnp
from jax import lax
from jax.experimental import pallas as pl
from jax.experimental.pallas import tpu as pltpu

EPS = 1e-12  # F.normalize default eps


def _rmsnorm_kernel(x_ref, g_ref, o_ref, *, H, W):
    L = H * W
    x = x_ref[...].astype(jnp.float32)                # (rows, L), lane-dense
    x2 = x * x

    # Sum of squares over H == sum over lane positions sharing the same
    # (lane mod W).  Shifts are multiples of W, cyclic mod L, so a shift tree
    # covers every h exactly once per lane, independent of roll direction.
    if H & (H - 1) == 0:                              # power-of-two H: log2(H) rolls
        s = x2
        shift = L // 2
        while shift >= W:
            s = s + pltpu.roll(s, shift, axis=1)
            shift //= 2
    else:                                             # generic fallback: H-1 rolls
        # TODO(synk): non-power-of-two H could use a mixed-radix roll tree.
        s = x2
        for h in range(1, H):
            s = s + pltpu.roll(x2, h * W, axis=1)

    # 1 / max(||x||, eps) == min(rsqrt(ss), 1/eps)  -> EUP rsqrt, no f32 divide
    inv = jnp.minimum(lax.rsqrt(s), 1.0 / EPS)

    # g_ref already holds g[k // W] * sqrt(H), shape (1, L)
    o_ref[...] = (x * inv * g_ref[...]).astype(o_ref.dtype)


def _pick_block_rows(n_rows, row_bytes, target_bytes=2 << 20):
    """Rows per block: ~2 MiB blocks, multiple of 8 (or the full extent)."""
    if n_rows * row_bytes <= target_bytes:
        return int(n_rows)
    rows = max(8, (target_bytes // row_bytes) // 8 * 8)
    return int(min(rows, n_rows))


def rmsnorm(x, g=None, normalize_dim=2):
    """x: [B, C, H, W]; g: [H] or None (scale=False). normalize_dim must be 2."""
    assert normalize_dim == 2, "kernel implemented for normalize_dim=2 (H axis)"
    B, C, H, W = x.shape
    L = H * W
    N = B * C

    if g is None:
        g = jnp.ones((H,), dtype=jnp.float32)         # scale=False -> multiply by 1
    # Fold sqrt(H) and the W-broadcast of g into one lane-aligned scale vector.
    gvec = (jnp.repeat(g.astype(jnp.float32), W) * (float(H) ** 0.5)).reshape(1, L)

    x2d = x.reshape(N, L)                             # free reshape (row-major)

    block_rows = _pick_block_rows(N, L * x.dtype.itemsize)
    grid = (pl.cdiv(N, block_rows),)

    out2d = pl.pallas_call(
        functools.partial(_rmsnorm_kernel, H=H, W=W),
        out_shape=jax.ShapeDtypeStruct((N, L), x.dtype),
        grid_spec=pltpu.PrefetchScalarGridSpec(
            num_scalar_prefetch=0,
            grid=grid,
            in_specs=[
                pl.BlockSpec((block_rows, L), lambda i: (i, 0)),
                pl.BlockSpec((1, L), lambda i: (0, 0)),
            ],
            out_specs=pl.BlockSpec((block_rows, L), lambda i: (i, 0)),
        ),
        compiler_params=pltpu.CompilerParams(
            dimension_semantics=("parallel",),
            vmem_limit_bytes=32 * 1024 * 1024,
        ),
    )(x2d, gvec)

    return out2d.reshape(B, C, H, W)


def rmsnorm_ref(x, g, normalize_dim=2):
    # pure-JAX reference mirroring F.normalize(x, dim=2) * g[..., None] * sqrt(H)
    norm = jnp.sqrt(jnp.sum(x * x, axis=normalize_dim, keepdims=True))
    norm = jnp.maximum(norm, EPS)
    H = x.shape[normalize_dim]
    return x / norm * g[None, None, :, None] * (H ** 0.5)


if __name__ == "__main__":
    key = jax.random.PRNGKey(0)
    kx, kg = jax.random.split(key)
    B, C, H, W = 2, 4, 16, 16
    x = jax.random.normal(kx, (B, C, H, W), dtype=jnp.float32)

    # Module __init__: self.g = nn.Parameter(torch.ones(dim)) with dim == H.
    # Use a perturbed (trained-like) g so the broadcast path is actually tested.
    g = 1.0 + 0.1 * jax.random.normal(kg, (H,), dtype=jnp.float32)

    out = jax.block_until_ready(rmsnorm(x, g))
    ref = rmsnorm_ref(x, g)

    assert out.shape == (B, C, H, W)
    assert jnp.allclose(out, ref, atol=1e-5, rtol=1e-5), float(
        jnp.max(jnp.abs(out - ref)))

    print("KERNEL_OK")
</pallas_src>

<mosaic_0001>
module attributes {stable_mosaic.version = 11 : i64} {
  func.func @_rmsnorm_kernel(%arg0: i32, %arg1: memref<8x256xf32, #tpu.memory_space<vmem>>, %arg2: memref<1x256xf32, #tpu.memory_space<vmem>>, %arg3: memref<8x256xf32, #tpu.memory_space<vmem>>) attributes {dimension_semantics = [#tpu.dimension_semantics<parallel>], iteration_bounds = array<i64: 1>, scalar_prefetch = 0 : i64, scratch_operands = 0 : i64, tpu.core_type = #tpu.core_type<tc>, window_params = [{transform_indices = @transform_0, window_bounds = array<i64: 8, 256>}, {pipeline_mode = #tpu.pipeline_mode<synchronous>, transform_indices = @transform_1, window_bounds = array<i64: 1, 256>}, {transform_indices = @transform_2, window_bounds = array<i64: 8, 256>}]} {
    %c0 = arith.constant 0 : index
    %c0_0 = arith.constant 0 : index
    %0 = vector.load %arg1[%c0, %c0_0] : memref<8x256xf32, #tpu.memory_space<vmem>>, vector<8x256xf32>
    %1 = arith.mulf %0, %0 : vector<8x256xf32>
    %c128_i32 = arith.constant 128 : i32
    %2 = tpu.dynamic_rotate %1 by %c128_i32 dim 1 : vector<8x256xf32>, i32 -> vector<8x256xf32>
    %3 = arith.addf %1, %2 : vector<8x256xf32>
    %c64_i32 = arith.constant 64 : i32
    %4 = tpu.dynamic_rotate %3 by %c64_i32 dim 1 : vector<8x256xf32>, i32 -> vector<8x256xf32>
    %5 = arith.addf %3, %4 : vector<8x256xf32>
    %c32_i32 = arith.constant 32 : i32
    %6 = tpu.dynamic_rotate %5 by %c32_i32 dim 1 : vector<8x256xf32>, i32 -> vector<8x256xf32>
    %7 = arith.addf %5, %6 : vector<8x256xf32>
    %c16_i32 = arith.constant 16 : i32
    %8 = tpu.dynamic_rotate %7 by %c16_i32 dim 1 : vector<8x256xf32>, i32 -> vector<8x256xf32>
    %9 = arith.addf %7, %8 : vector<8x256xf32>
    %10 = math.rsqrt %9 : vector<8x256xf32>
    %cst = arith.constant 9.99999995E+11 : f32
    %11 = vector.broadcast %cst : f32 to vector<8x256xf32>
    %12 = arith.minimumf %10, %11 : vector<8x256xf32>
    %13 = arith.mulf %0, %12 : vector<8x256xf32>
    %c0_1 = arith.constant 0 : index
    %c0_2 = arith.constant 0 : index
    %14 = vector.load %arg2[%c0_1, %c0_2] : memref<1x256xf32, #tpu.memory_space<vmem>>, vector<1x256xf32>
    %15 = vector.broadcast %14 : vector<1x256xf32> to vector<8x256xf32>
    %16 = arith.mulf %13, %15 : vector<8x256xf32>
    %c0_3 = arith.constant 0 : index
    %c0_4 = arith.constant 0 : index
    %17 = vector.load %arg3[%c0_3, %c0_4] : memref<8x256xf32, #tpu.memory_space<vmem>>, vector<8x256xf32>
    tpu.vector_store %arg3[%c0_3, %c0_4], %16 {strides = array<i32>} : memref<8x256xf32, #tpu.memory_space<vmem>>, vector<8x256xf32>,
    return
  }
  func.func @transform_0(%arg0: i32) -> (i32, i32) {
    %c0_i32 = arith.constant 0 : i32
    %c0_i32_0 = arith.constant 0 : i32
    return %arg0, %c0_i32 : i32, i32
  }
  func.func @transform_1(%arg0: i32) -> (i32, i32) {
    %c0_i32 = arith.constant 0 : i32
    %c0_i32_0 = arith.constant 0 : i32
    %c0_i32_1 = arith.constant 0 : i32
    return %c0_i32, %c0_i32_0 : i32, i32
  }
  func.func @transform_2(%arg0: i32) -> (i32, i32) {
    %c0_i32 = arith.constant 0 : i32
    %c0_i32_0 = arith.constant 0 : i32
    return %arg0, %c0_i32 : i32, i32
  }
}

</mosaic_0001>

<bundles_post_ra>
// kernel: tpu_custom_call.1
= control target key start
LH: loop header
LB: loop body
LE: loop exit
PB: predicated region body
PF: predicated region fallthrough
CT: control target
= control target key end

     0   :  { %7 = vsyncpa [#allocation3], 0  ;;  %s213_s0 = inlined_call_operand.hbm [shape: f32[8,256], index: 0, kind: input, shape index: {}]   ;;  %s214_s1 = inlined_call_operand.hbm [shape: f32[1,256], index: 1, kind: input, shape index: {}]   ;;  %s215_s2 = inlined_call_operand.hbm [shape: f32[8,256], index: 2, kind: output, shape index: {}]  }
   0x1   :  { %8 = vsyncpa [#allocation6], 0 }
   0x2   :  { %9 = vsyncpa [#allocation4], 0  ;;  %s15_s11 = sshll.u32 %s213_s0, 4  ;;  %s183_s12 = smov [#allocation2]   ;;  %s16_s11 = int_to_ptr.hbm [resolvable:$true] %s15_s11 }
   0x3   :  { %s17_s13 = sshll.u32 %s183_s12, 4  ;;  %s26_s16 = sshll.u32 %s214_s1, 4  ;;  %s18_s13 = int_to_ptr.vmem [resolvable:$true] %s17_s13  ;;  %s27_s16 = int_to_ptr.hbm [resolvable:$true] %s26_s16 }
   0x4   :  { %20 = dma.hbm_to_vmem [thread:$0]  %s16_s11, 256, %s18_s13, [#allocation3]  }
   0x5   :  { %s184_s17 = smov [#allocation5]  }
   0x6   :  { %s28_s18 = sshll.u32 %s184_s17, 4  ;;  %s29_s18 = int_to_ptr.vmem [resolvable:$true] %s28_s18 }
   0x7   :  { %31 = dma.hbm_to_vmem [thread:$0]  %s27_s16, 32, %s29_s18, [#allocation6]  }
   0x8   :  { %177 = dma.done.wait [#allocation3], 256  }
   0x9   :  { %178 = vsyncadd [#allocation3], 4294967040 }
   0xa   :  { %179 = dma.done.wait [#allocation6], 32  }
   0xb   :  { %180 = vsyncadd [#allocation6], 4294967264  ;;  %v40_v0 = vld [vmem:[#allocation2] sm:$0xff]  ;;  %v41_v1 = vld [vmem:[#allocation2 + $0x8] sm:$0xff]  ;;  %s185_s0 = smov 64   ;;  %s186_s1 = smov 32  }
   0xc   :  { %v42_v2 = vmul.f32 %v40_v0, %v40_v0  ;;  %v43_v3 = vmul.f32 %v41_v1, %v41_v1  ;;  %s187_s19 = smov 16   ;;  %v69_v17 = vld [vmem:[#allocation5] sm:$0x3]  ;;  %s188_s20 = smov [#allocation7]  }
   0xd   :  { %v71_v20 = vperm.slane %v69_v17, 0  ;;  %v72_v21 = vperm.slane %v69_v17, 1  ;;  %s84_s21 = sshll.u32 %s188_s20, 4  ;;  %s86_s24 = sshll.u32 %s215_s2, 4  ;;  %s85_s21 = int_to_ptr.vmem [resolvable:$true] %s84_s21  ;;  %s87_s24 = int_to_ptr.hbm [resolvable:$true] %s86_s24 }
   0xe   :  { %v44_v4 = vadd.f32 %v43_v3, %v42_v2 }
  0x10   :  { %45 = vrot.lane.b32.xlu0 %v44_v4, %s185_s0 }
  0x82   :  { %v46_v5 = vpop.permute.xlu0 %45 }
  0x83   :  { %v49_v6 = vadd.f32 %v46_v5, %v44_v4 }
  0x85   :  { %50 = vrot.lane.b32.xlu0 %v49_v6, %s186_s1 }
  0xf7   :  { %v51_v7 = vpop.permute.xlu0 %50 }
  0xf8   :  { %v52_v8 = vadd.f32 %v51_v7, %v49_v6 }
  0xfa   :  { %53 = vrot.lane.b32.xlu1 %v52_v8, %s187_s19 }
 0x16c   :  { %v54_v9 = vpop.permute.xlu1 %53 }
 0x16d   :  { %v55_v10 = vadd.f32 %v54_v9, %v52_v8 }
 0x16f   :  { %103 = vrsqrt.f32 %v55_v10  ;;  %vm62_vm1 = vweird.f32 %v55_v10 }
 0x175   :  { %v104_v11 = vpop.eup %103 }
 0x176   :  { %v57_v12 = vmul.f32 %v104_v11, %v55_v10  ;;  %vm63_vm0 = vweird.f32 %v104_v11 }
 0x177   :  { %vm64_vm2 = vmor %vm62_vm1, %vm63_vm0 }
 0x178   :  { %v58_v13 = vmul.f32 %v104_v11, %v57_v12 }
 0x17a   :  { %v59_v14 = vmul.f32 0.5, %v58_v13 }
 0x17c   :  { %v60_v15 = vsub.f32 1.5, %v59_v14 }
 0x17e   :  { %v61_v16 = vmul.f32 %v104_v11, %v60_v15 }
 0x180   :  { %v65_v18 = vsel %vm64_vm2, %v104_v11, %v61_v16 }
 0x181   :  { %v66_v19 = vmin.f32 %v65_v18, 1e+12 }
 0x183   :  { %v67_v22 = vmul.f32 %v66_v19, %v40_v0  ;;  %v68_v23 = vmul.f32 %v66_v19, %v41_v1 }
 0x185   :  { %v75_v24 = vmul.f32 %v71_v20, %v67_v22  ;;  %v76_v25 = vmul.f32 %v72_v21, %v68_v23 }
 0x187   :  { %77 = vst [vmem:[#allocation7] sm:$0xff] %v75_v24 }
 0x188   :  { %78 = vst [vmem:[#allocation7 + $0x8] sm:$0xff] %v76_v25 }
 0x189   :  { %89 = dma.vmem_to_hbm [thread:$0]  %s85_s21, 256, %s87_s24, [#allocation4]  }
 0x18a   :  { %181 = dma.done.wait [#allocation4], 256  }
 0x18b   :  { %182 = vsyncadd [#allocation4], 4294967040 }
 0x18c   :  { %94 = vsyncpa [#allocation3], 1 }
 0x18d   :  { %95 = vsyncpa [#allocation6], 1 }
 0x18e   :  { %96 = vsyncpa [#allocation4], 1 }

</bundles_post_ra>
